<compile_context>
chip_gen: v7x
topology: tpu7x:2x2x1
jax: 0.10.0
libtpu: 0.0.40
codegen_flags: <defaults>
</compile_context>

<pallas_src>
import functools

import jax
import jax.numpy as jnp
from jax.experimental import pallas as pl
from jax.experimental.pallas import tpu as pltpu


# --------------------------------------------------------------------------
# Stage 1: batched MLP + group softmax on the pooled features (one block).
# --------------------------------------------------------------------------
def _attention_kernel(pooled_ref, w1t_ref, b1_ref, w2t_ref, b2_ref, att_ref, *,
                      groups):
    # pooled_ref: (B, C)    f32, lane-major (C on lanes)
    # w1t_ref   : (C, C4)   = W1.T   (pre-transposed in the wrapper)
    # b1_ref    : (1, C4)
    # w2t_ref   : (C4, C)   = W2.T
    # b2_ref    : (1, C)
    # att_ref   : (B, C)    f32 output (softmax over the group axis)
    pooled = pooled_ref[...]                                          # (B, C)

    # Batched MLP: (B,C)@(C,C4) and (B,C4)@(C4,C) instead of N=1 matvecs.
    h1 = jnp.dot(pooled, w1t_ref[...],
                 preferred_element_type=jnp.float32) + b1_ref[...]    # (B, C4)
    h1 = jnp.maximum(h1, 0.0)
    logits = jnp.dot(h1, w2t_ref[...],
                     preferred_element_type=jnp.float32) + b2_ref[...]  # (B, C)

    # Softmax across groups: channel index = g * GC + j, softmax over g for
    # each fixed j.  Keep everything lane-major; the group members are the G
    # lane-slices of width GC, combined elementwise (G is a tiny static loop).
    gc = logits.shape[-1] // groups
    parts = [logits[:, g * gc:(g + 1) * gc] for g in range(groups)]   # (B, GC)
    m = parts[0]
    for p in parts[1:]:
        m = jnp.maximum(m, p)
    exps = [jnp.exp(p - m) for p in parts]
    denom = exps[0]
    for e in exps[1:]:
        denom = denom + e
    att_ref[...] = jnp.concatenate([e / denom for e in exps], axis=-1)  # (B, C)


# --------------------------------------------------------------------------
# Stage 2: per-channel rescale of x, tiled over the spatial (lane) axis.
# --------------------------------------------------------------------------
def _rescale_kernel(x_ref, att_ref, o_ref):
    # x_ref  : (C, T_HW)   one spatial tile of one batch element
    # att_ref: (C, 1)      per-channel attention (f32), broadcast over lanes
    # o_ref  : (C, T_HW)
    x = x_ref[...].astype(jnp.float32)
    o_ref[...] = (x * att_ref[...]).astype(o_ref.dtype)


def _pick_hw_tile(hw, c, itemsize):
    """Spatial tile: multiple of 128, ~2 MiB per (C, T) block."""
    if hw <= 1024:
        return hw                       # full-extent block is always legal
    target_bytes = 2 * 1024 * 1024
    t = (target_bytes // (c * itemsize)) // 128 * 128
    t = max(128, min(t, 2048))
    # Boundary blocks (when T does not divide HW) are masked by Pallas;
    # the op is elementwise so padded lanes are harmless.
    return int(min(t, (hw // 128) * 128))


@functools.partial(jax.jit, static_argnames=("groups",))
def split_attention(x_nchw, w1, b1, w2, b2, *, groups=2):
    b, c, h, w = x_nchw.shape
    assert c % groups == 0, "channels must be divisible by groups"
    assert c % 4 == 0, "channels must be divisible by 4 (MLP bottleneck)"
    hw = h * w
    c4 = c // 4

    x_flat = x_nchw.reshape(b, c, hw)

    # ---- Stage 1a: global average pool (tiny reduction, hoisted to XLA so x
    #      is only streamed once per stage; f32 accumulation). ----
    pooled = jnp.mean(x_flat.astype(jnp.float32), axis=-1)            # (B, C)

    # ---- Stage 1b: MLP + group softmax (one-block Pallas kernel). ----
    w1t = w1.astype(jnp.float32).T                                    # (C, C4)
    w2t = w2.astype(jnp.float32).T                                    # (C4, C)
    b1r = b1.astype(jnp.float32).reshape(1, c4)
    b2r = b2.astype(jnp.float32).reshape(1, c)

    att = pl.pallas_call(
        functools.partial(_attention_kernel, groups=groups),
        out_shape=jax.ShapeDtypeStruct((b, c), jnp.float32),
    )(pooled, w1t, b1r, w2t, b2r)

    # ---- Stage 2: tiled elementwise rescale (all the HBM traffic). ----
    att3 = att.reshape(b, c, 1)
    t_hw = _pick_hw_tile(hw, c, jnp.dtype(x_flat.dtype).itemsize)
    n_t = pl.cdiv(hw, t_hw)

    out = pl.pallas_call(
        _rescale_kernel,
        out_shape=jax.ShapeDtypeStruct((b, c, hw), x_flat.dtype),
        grid=(b, n_t),
        in_specs=[
            pl.BlockSpec((None, c, t_hw), lambda i, j: (i, 0, j)),   # x tile
            pl.BlockSpec((None, c, 1), lambda i, j: (i, 0, 0)),      # att
        ],
        out_specs=pl.BlockSpec((None, c, t_hw), lambda i, j: (i, 0, j)),
        compiler_params=pltpu.CompilerParams(
            dimension_semantics=("parallel", "parallel")),
    )(x_flat, att3)

    return out.reshape(b, c, h, w)


def split_attention_ref(x, w1, b1, w2, b2, *, groups=2):
    """Pure-JAX reference matching the PyTorch forward."""
    b, c, h, w = x.shape
    gc = c // groups
    pooled = jnp.mean(x.astype(jnp.float32), axis=(2, 3))             # (b, c)
    h1 = jnp.maximum(pooled @ w1.T + b1, 0.0)
    mlp = h1 @ w2.T + b2                                              # (b, c)
    att = jax.nn.softmax(mlp.reshape(b, groups, gc), axis=1)
    out = x.astype(jnp.float32).reshape(b, groups, gc, h, w) * att[..., None, None]
    return out.reshape(b, c, h, w)


if __name__ == "__main__":
    # Small shapes consistent with the module: channels divisible by groups (=2)
    # and by 4 (for the MLP bottleneck).
    B, C, H, W = 2, 8, 16, 16
    GROUPS = 2

    key = jax.random.PRNGKey(0)
    kx, k1, k2, k3, k4 = jax.random.split(key, 5)

    x = jax.random.normal(kx, (B, C, H, W), dtype=jnp.float32)
    # PyTorch nn.Linear layout: (out, in).
    w1 = jax.random.normal(k1, (C // 4, C), dtype=jnp.float32) * 0.1
    b1 = jax.random.normal(k2, (C // 4,), dtype=jnp.float32) * 0.1
    w2 = jax.random.normal(k3, (C, C // 4), dtype=jnp.float32) * 0.1
    b2 = jax.random.normal(k4, (C,), dtype=jnp.float32) * 0.1

    # f32 path: exact comparison against the pure-JAX reference.
    out = jax.block_until_ready(split_attention(x, w1, b1, w2, b2, groups=GROUPS))
    ref = split_attention_ref(x, w1, b1, w2, b2, groups=GROUPS)
    assert out.shape == (B, C, H, W)
    assert jnp.allclose(out, ref, atol=1e-5, rtol=1e-5), "mismatch vs reference"

    # bf16 I/O path (halves HBM traffic on the rescale stage; pool/MLP stay f32).
    out_bf16 = jax.block_until_ready(
        split_attention(x.astype(jnp.bfloat16), w1, b1, w2, b2, groups=GROUPS))
    assert out_bf16.dtype == jnp.bfloat16
    assert jnp.allclose(out_bf16.astype(jnp.float32), ref, atol=1e-1, rtol=1e-1)

    print("KERNEL_OK")
</pallas_src>

<mosaic_0001>
module attributes {stable_mosaic.version = 11 : i64} {
  func.func @_attention_kernel(%arg0: memref<2x8xf32, #tpu.memory_space<vmem>>, %arg1: memref<8x2xf32, #tpu.memory_space<vmem>>, %arg2: memref<1x2xf32, #tpu.memory_space<vmem>>, %arg3: memref<2x8xf32, #tpu.memory_space<vmem>>, %arg4: memref<1x8xf32, #tpu.memory_space<vmem>>, %arg5: memref<2x8xf32, #tpu.memory_space<vmem>>) attributes {dimension_semantics = [], scalar_prefetch = 0 : i64, scratch_operands = 0 : i64, tpu.core_type = #tpu.core_type<tc>} {
    %c0 = arith.constant 0 : index
    %c0_0 = arith.constant 0 : index
    %0 = vector.load %arg0[%c0, %c0_0] : memref<2x8xf32, #tpu.memory_space<vmem>>, vector<2x8xf32>
    %c0_1 = arith.constant 0 : index
    %c0_2 = arith.constant 0 : index
    %1 = vector.load %arg1[%c0_1, %c0_2] : memref<8x2xf32, #tpu.memory_space<vmem>>, vector<8x2xf32>
    %cst = arith.constant dense<0.000000e+00> : vector<2x2xf32>
    %2 = tpu.matmul %0, %1, %cst {dimension_numbers = #tpu.dot_dimension_numbers<[1], [0], [0], [1], [0, 0, 1, 1], [], []>} : vector<2x8xf32>, vector<8x2xf32>, vector<2x2xf32> -> vector<2x2xf32>
    %c0_3 = arith.constant 0 : index
    %c0_4 = arith.constant 0 : index
    %3 = vector.load %arg2[%c0_3, %c0_4] : memref<1x2xf32, #tpu.memory_space<vmem>>, vector<1x2xf32>
    %4 = vector.broadcast %3 : vector<1x2xf32> to vector<2x2xf32>
    %5 = arith.addf %2, %4 : vector<2x2xf32>
    %cst_5 = arith.constant 0.000000e+00 : f32
    %6 = vector.broadcast %cst_5 : f32 to vector<2x2xf32>
    %7 = arith.maximumf %5, %6 : vector<2x2xf32>
    %c0_6 = arith.constant 0 : index
    %c0_7 = arith.constant 0 : index
    %8 = vector.load %arg3[%c0_6, %c0_7] : memref<2x8xf32, #tpu.memory_space<vmem>>, vector<2x8xf32>
    %cst_8 = arith.constant dense<0.000000e+00> : vector<2x8xf32>
    %9 = tpu.matmul %7, %8, %cst_8 {dimension_numbers = #tpu.dot_dimension_numbers<[1], [0], [0], [1], [0, 0, 1, 1], [], []>} : vector<2x2xf32>, vector<2x8xf32>, vector<2x8xf32> -> vector<2x8xf32>
    %c0_9 = arith.constant 0 : index
    %c0_10 = arith.constant 0 : index
    %10 = vector.load %arg4[%c0_9, %c0_10] : memref<1x8xf32, #tpu.memory_space<vmem>>, vector<1x8xf32>
    %11 = vector.broadcast %10 : vector<1x8xf32> to vector<2x8xf32>
    %12 = arith.addf %9, %11 : vector<2x8xf32>
    %13 = vector.extract_strided_slice %12 {offsets = [0, 0], sizes = [2, 4], strides = [1, 1]} : vector<2x8xf32> to vector<2x4xf32>
    %14 = vector.extract_strided_slice %12 {offsets = [0, 4], sizes = [2, 4], strides = [1, 1]} : vector<2x8xf32> to vector<2x4xf32>
    %15 = arith.maximumf %13, %14 : vector<2x4xf32>
    %16 = arith.subf %13, %15 : vector<2x4xf32>
    %17 = math.exp %16 : vector<2x4xf32>
    %18 = arith.subf %14, %15 : vector<2x4xf32>
    %19 = math.exp %18 : vector<2x4xf32>
    %20 = arith.addf %17, %19 : vector<2x4xf32>
    %21 = arith.divf %17, %20 : vector<2x4xf32>
    %22 = arith.divf %19, %20 : vector<2x4xf32>
    %23 = tpu.concatenate %21, %22 in 1 : vector<2x4xf32>, vector<2x4xf32> -> vector<2x8xf32>
    %c0_11 = arith.constant 0 : index
    %c0_12 = arith.constant 0 : index
    %24 = vector.load %arg5[%c0_11, %c0_12] : memref<2x8xf32, #tpu.memory_space<vmem>>, vector<2x8xf32>
    tpu.vector_store %arg5[%c0_11, %c0_12], %23 {strides = array<i32>} : memref<2x8xf32, #tpu.memory_space<vmem>>, vector<2x8xf32>,
    return
  }
}

module attributes {stable_mosaic.version = 11 : i64} {
  func.func @_rescale_kernel(%arg0: i32, %arg1: i32, %arg2: memref<1x8x256xf32, #tpu.memory_space<vmem>>, %arg3: memref<1x8x1xf32, #tpu.memory_space<vmem>>, %arg4: memref<1x8x256xf32, #tpu.memory_space<vmem>>) attributes {dimension_semantics = [#tpu.dimension_semantics<parallel>, #tpu.dimension_semantics<parallel>], iteration_bounds = array<i64: 2, 1>, scalar_prefetch = 0 : i64, scratch_operands = 0 : i64, tpu.core_type = #tpu.core_type<tc>, window_params = [{transform_indices = @transform_0, window_bounds = array<i64: 1, 8, 256>}, {transform_indices = @transform_1, window_bounds = array<i64: 1, 8, 1>}, {transform_indices = @transform_2, window_bounds = array<i64: 1, 8, 256>}]} {
    %c0 = arith.constant 0 : index
    %c0_0 = arith.constant 0 : index
    %c0_1 = arith.constant 0 : index
    %0 = vector.load %arg2[%c0, %c0_0, %c0_1] : memref<1x8x256xf32, #tpu.memory_space<vmem>>, vector<1x8x256xf32>
    %1 = vector.shape_cast %0 : vector<1x8x256xf32> to vector<8x256xf32>
    %c0_2 = arith.constant 0 : index
    %c0_3 = arith.constant 0 : index
    %c0_4 = arith.constant 0 : index
    %2 = vector.load %arg3[%c0_2, %c0_3, %c0_4] : memref<1x8x1xf32, #tpu.memory_space<vmem>>, vector<1x8x1xf32>
    %3 = vector.shape_cast %2 : vector<1x8x1xf32> to vector<8x1xf32>
    %4 = vector.broadcast %3 : vector<8x1xf32> to vector<8x256xf32>
    %5 = arith.mulf %1, %4 : vector<8x256xf32>
    %c0_5 = arith.constant 0 : index
    %c0_6 = arith.constant 0 : index
    %c0_7 = arith.constant 0 : index
    %6 = vector.load %arg4[%c0_5, %c0_6, %c0_7] : memref<1x8x256xf32, #tpu.memory_space<vmem>>, vector<1x8x256xf32>
    %7 = vector.shape_cast %6 : vector<1x8x256xf32> to vector<8x256xf32>
    %8 = vector.shape_cast %5 : vector<8x256xf32> to vector<1x8x256xf32>
    tpu.vector_store %arg4[%c0_5, %c0_6, %c0_7], %8 {strides = array<i32>} : memref<1x8x256xf32, #tpu.memory_space<vmem>>, vector<1x8x256xf32>,
    return
  }
  func.func @transform_0(%arg0: i32, %arg1: i32) -> (i32, i32, i32) {
    %c0_i32 = arith.constant 0 : i32
    %c0_i32_0 = arith.constant 0 : i32
    return %arg0, %c0_i32, %arg1 : i32, i32, i32
  }
  func.func @transform_1(%arg0: i32, %arg1: i32) -> (i32, i32, i32) {
    %c0_i32 = arith.constant 0 : i32
    %c0_i32_0 = arith.constant 0 : i32
    %c0_i32_1 = arith.constant 0 : i32
    return %arg0, %c0_i32, %c0_i32_0 : i32, i32, i32
  }
  func.func @transform_2(%arg0: i32, %arg1: i32) -> (i32, i32, i32) {
    %c0_i32 = arith.constant 0 : i32
    %c0_i32_0 = arith.constant 0 : i32
    return %arg0, %c0_i32, %arg1 : i32, i32, i32
  }
}

</mosaic_0001>

<bundles_post_ra>
// kernel: split_attention.2
= control target key start
LH: loop header
LB: loop body
LE: loop exit
PB: predicated region body
PF: predicated region fallthrough
CT: control target
= control target key end

     0   :  { %vm29_vm0 = vcmask 64512   ;;  %v257_v0 = vmov 0.0   ;;  %vm258_vm1 = vmmov 0   ;;  %vm116_vm2 = vcmask 1041408   ;;  %s260_s26 = smov 4   ;;  %s309_s1 = inlined_call_operand.vmem [shape: f32[8,2], index: 1, kind: input, shape index: {}]   ;;  %s310_s0 = inlined_call_operand.vmem [shape: f32[2,8], index: 0, kind: input, shape index: {}]   ;;  %s311_s3 = inlined_call_operand.vmem [shape: f32[2,8], index: 3, kind: input, shape index: {}]   ;;  %s312_s2 = inlined_call_operand.vmem [shape: f32[1,2], index: 2, kind: input, shape index: {}]   ;;  %s313_s4 = inlined_call_operand.vmem [shape: f32[1,8], index: 4, kind: input, shape index: {}]   ;;  %s314_s5 = inlined_call_operand.vmem [shape: f32[2,8], index: 5, kind: output, shape index: {}]  }
   0x1   :  { %235 = vmatprep.subr.mxu0 %v257_v0  ;;  %v21_v1 = vld [vmem:[%s309_s1] sm:$0xff]  ;;  %237 = vmatprep.mubr.msk.f32.mxu0 %vm258_vm1, %v257_v0  ;;  %vm112_vm3 = vcmask 15360   ;;  %vm218_vm4 = vcmask 31744   ;;  %vm220_vm5 = vcmask 58368  }
   0x2   :  { %v20_v2 = vld [vmem:[%s310_s0] sm:$0x3]  ;;  %236 = vmatpush3.msra.mxu0 %v21_v1  ;;  %240 = vmatprep.subr.mxu1 %v257_v0 }
   0x3   :  { %238 = vmatmul.mubr.msk.f32.vlgmr.msra.gmra.mrb[0].mxu0 %vm29_vm0, %v20_v2  ;;  %242 = vmatprep.mubr.msk.f32.mxu1 %vm258_vm1, %v257_v0  ;;  %v104_v3 = vld [vmem:[%s311_s3] sm:$0x3]  ;;  %s259_s3 = smov 124  }
   0x4   :  { %241 = vmatpush3.msk.msra.mxu1 %vm116_vm2, %v104_v3  ;;  %v226_v4 = vld [vmem:[%s312_s2] ss:$0 sm:$0xff] }
   0x5   :  { %v228_v9 = vld [vmem:[%s313_s4] ss:$0 sm:$0xff] }
  0xd6   :  { %v99_v5 = vpop.f32.mrb[0].mxu0 }
  0xd7   :  { %v100_v6 = vadd.f32 %v226_v4, %v99_v5  ;;  %v239_v7 = vpop.f32.mrb[1].mxu0 }
  0xd9   :  { %v103_v8 = vmax.f32 %v100_v6, 0.0 }
  0xdb   :  { %243 = vmatmul.mubr.msk.f32.vlgmr.msra.gmra.mrb[0].mxu1 %vm112_vm3, %v103_v8 }
 0x1ae   :  { %v186_v10 = vpop.f32.mrb[0].mxu1 }
 0x1af   :  { %v187_v11 = vadd.f32 %v228_v9, %v186_v10  ;;  %v244_v12 = vpop.f32.mrb[1].mxu1 }
 0x1b1   :  { %191 = vrot.lane.b32.xlu0 %v187_v11, %s259_s3 }
 0x223   :  { %v192_v13 = vpop.permute.xlu0 %191 }
 0x224   :  { %v194_v14 = vmax.f32 %v187_v11, %v192_v13 }
 0x226   :  { %199 = vrot.lane.b32.xlu0 %v194_v14, %s260_s26  ;;  %v195_v19 = vsub.f32 %v187_v11, %v194_v14 }
 0x228   :  { %v196_v20 = vmul.f32 1.442695, %v195_v19 }
 0x298   :  { %v200_v15 = vpop.permute.xlu0 %199 }
 0x299   :  { %v202_v16 = vsub.f32 %v187_v11, %v200_v15 }
 0x29b   :  { %v203_v17 = vmul.f32 1.442695, %v202_v16 }
 0x29d   :  { %249 = vpow2.f32 %v203_v17 }
 0x29e   :  { %251 = vpow2.f32 %v196_v20 }
 0x2a7   :  { %v250_v18 = vpop.eup %249 }
 0x2a8   :  { %206 = vrot.lane.b32.xlu1 %v250_v18, %s259_s3  ;;  %v252_v21 = vpop.eup %251 }
 0x31a   :  { %v207_v22 = vpop.permute.xlu1 %206 }
 0x31b   :  { %v209_v23 = vadd.f32 %v252_v21, %v207_v22 }
 0x31d   :  { %253 = vrcp.f32 %v209_v23  ;;  %213 = vrot.lane.b32.xlu1 %v209_v23, %s260_s26 }
 0x327   :  { %v254_v24 = vpop.eup %253 }
 0x328   :  { %v211_v25 = vmul.f32 %v254_v24, %v252_v21 }
 0x38f   :  { %v214_v26 = vpop.permute.xlu1 %213 }
 0x390   :  { %255 = vrcp.f32 %v214_v26 }
 0x39a   :  { %v256_v27 = vpop.eup %255 }
 0x39b   :  { %v217_v28 = vmul.f32 %v256_v27, %v250_v18 }
 0x39d   :  { %v219_v29 = vsel %vm218_vm4, %v211_v25, %v217_v28 }
 0x39e   :  { %221 = vst.msk [vmem:[%s314_s5] sm:$0x3] %vm220_vm5, %v219_v29 }

// kernel: split_attention.3
= control target key start
LH: loop header
LB: loop body
LE: loop exit
PB: predicated region body
PF: predicated region fallthrough
CT: control target
= control target key end

     0   :  { %s391_s9 = smov 0   ;;  %s393_s10 = smov 0   ;;  %s424_s0 = inlined_call_operand.vmem [shape: f32[2,8,256], index: 0, kind: input, shape index: {}]   ;;  %s425_s1 = inlined_call_operand.vmem [shape: f32[2,8,1], index: 1, kind: input, shape index: {}]   ;;  %s426_s2 = inlined_call_operand.vmem [shape: f32[2,8,256], index: 2, kind: output, shape index: {}]  }
   0x1   :  { %s395_s11 = smov 0  }
   0x2 LB: > { %s24_s12 = sadd.s32 1, %s369_s10  ;;  %p315_p0 = scmp.ge.s32.totalorder %s373_s11, 1  ;;  %s373_s11 = sphi %s395_s11, %s12_s11   ;;  %s369_s10 = sphi %s393_s10, %s428_s10   ;;  %s365_s9 = sphi %s391_s9, %s427_s9  }
   0x3   : > { %p26_p1 = scmp.ge.s32.totalorder %s24_s12, 2  ;;  %p142_p2 = scmp.lt.s32.totalorder %s373_s11, 3 }
   0x5   : > { %s430_s12 = smov (%p26_p1, %s24_s12), 0  ;;  %p143_p3 = pnand %p315_p0, %p142_p2 }
   0x6   : > { %p177_p4 = scmp.lt.s32.totalorder (!%p143_p3), %s365_s9, 1  ;;  %v375_v0 = vmov (!%p143_p3), 0  }
   0x7   : > { %146 = sbr.rel (%p143_p3) target bundleno = 149 (0x95), region = 28  ;;  %350 = vset.pattern.permute.xlu0 (!%p143_p3), %v375_v0 }
   0xe   : > { %s432_s9 = smov (!%p177_p4, %s365_s9), 1 }
   0xf   : > { %s318_s13 = sshll.u32 %s432_s9, 3  ;;  %s323_s17 = sshll.u32 %s432_s9, 4 }
  0x10   : > { %s189_s16 = scalar_lea.vmem %s425_s1, %s318_s13  ;;  %s184_s20 = scalar_lea.vmem %s424_s0, %s323_s17 }
  0x11   : > { %v202_v1 = vld [vmem:[%s189_s16] sm:$0xff]  ;;  %v201_v3 = vld [vmem:[%s184_s20 + $0x8] sm:$0xff]  ;;  %s198_s23 = scalar_lea.vmem %s426_s2, %s323_s17 }
  0x12   : > { %205 = vperm.xlu0 %350, %v202_v1   ;;  %v200_v2 = vld [vmem:[%s184_s20] sm:$0xff] }
  0x91   : > { %v206_v4 = vpop.permute.xlu0 %205 }
  0x92   : > { %v208_v5 = vmul.f32 %v206_v4, %v200_v2  ;;  %v209_v6 = vmul.f32 %v206_v4, %v201_v3 }
  0x94   : > { %210 = vst [vmem:[%s198_s23] sm:$0xff] %v208_v5  ;;  %211 = vst [vmem:[%s198_s23 + $0x8] sm:$0xff] %v209_v6 }
  0x95 PF: > { %s12_s11 = sadd.s32 1, %s373_s11   ;;  %s427_s9 = smov %s369_s10 }
  0x96   : > { %p9_p5 = scmp.ge.s32.totalorder %s12_s11, 4   ;;  %s428_s10 = smov %s430_s12 }
  0x98   :  { %11 = sbr.rel (!%p9_p5) target bundleno = 2 (0x2), region = 61 }

</bundles_post_ra>
